<compile_context>
chip_gen: v5e
topology: v5e:2x2
jax: 0.10.0
libtpu: 0.0.40
codegen_flags: <defaults>
</compile_context>

<pallas_src>
import functools
import math

import jax
import jax.numpy as jnp
from jax.experimental import pallas as pl
from jax.experimental.pallas import tpu as pltpu


# --------------------------- small helpers ---------------------------------

def _pick_row_tile(M):
    # Prefer MXU-friendly multiples of 256, then fall back to the largest
    # 8-aligned divisor of M.
    for t in (512, 256):
        if M % t == 0:
            return t
    for t in (128, 64, 32, 16, 8):
        if M % t == 0:
            return t
    return M


def _const_spec(shape, index_map):
    """BlockSpec for grid-invariant operands (weights/biases/LN params).

    Their index_map never changes across the grid, so double-buffering only
    doubles VMEM residency; request single-buffering when the installed
    Pallas supports pipeline_mode / pl.Buffered, else fall back silently.
    """
    try:
        return pl.BlockSpec(shape, index_map, pipeline_mode=pl.Buffered(1))
    except (AttributeError, TypeError):
        return pl.BlockSpec(shape, index_map)


def _vmem_limit(*byte_counts):
    # Sized from the actual block working set, with headroom; never below the
    # common 32 MiB scoped default, capped well under v5e/v6e physical VMEM.
    need = int(sum(byte_counts)) + (4 << 20)
    return int(min(max(need, 32 << 20), 96 << 20))


def _layer_norm_f32(x, gamma, beta, eps):
    mean = jnp.mean(x, axis=-1, keepdims=True)
    var = jnp.mean((x - mean) ** 2, axis=-1, keepdims=True)
    return (x - mean) * jax.lax.rsqrt(var + eps) * gamma + beta


# ---------------------------------------------------------------------------
# Kernel 1: fused attention block (one program per batch element)
#   LN1 -> fused QKV matmul -> per-head masked softmax -> one Wo matmul -> +x
# ---------------------------------------------------------------------------
def _attn_block_kernel(x_ref, mask_ref, g_ref, bta_ref, wqkv_ref, bqkv_ref,
                       wo_ref, bo_ref, o_ref, *, heads, d_k, scale, eps):
    x = x_ref[...].astype(jnp.float32)                          # (S, D) f32

    # --- pre-norm LayerNorm (f32 math) ---
    h = _layer_norm_f32(x, g_ref[...], bta_ref[...], eps)       # (S, D)

    # --- fused QKV projection: one bf16 MXU matmul, f32 accumulation ---
    qkv = jnp.dot(h.astype(jnp.bfloat16), wqkv_ref[...],
                  preferred_element_type=jnp.float32)
    qkv = qkv + bqkv_ref[...]                                   # (S, 3D) f32
    D = heads * d_k
    q, k, v = qkv[:, :D], qkv[:, D:2 * D], qkv[:, 2 * D:]

    # Hoisted out of the head loop: softmax scale folded into q once, and the
    # key-padding bias computed once (JAX does not CSE broadcast_in_dim).
    qb = (q * scale).astype(jnp.bfloat16)                       # (S, D) bf16
    kb = k.astype(jnp.bfloat16)
    vb = v.astype(jnp.bfloat16)
    key_pad = mask_ref[...]                                     # (1, S) int32
    pad_bias = jnp.where(key_pad > 0, jnp.float32(-1e9), jnp.float32(0.0))

    # Contract the last dims of q and k directly (no k.T / XLU transpose).
    dn = (((1,), (1,)), ((), ()))
    # TODO(synk): for long sequences, tile the query rows and K/V flash-style
    # (online softmax) instead of materializing full (S,S) scores per head.
    # TODO(synk): when d_k < 128, process heads in 128-lane-aligned groups to
    # avoid lane-crossing column slices; fine at the small shapes used here.
    ctx_parts = []
    for hh in range(heads):                                     # static unroll
        lo = hh * d_k
        s = jax.lax.dot_general(qb[:, lo:lo + d_k], kb[:, lo:lo + d_k], dn,
                                preferred_element_type=jnp.float32)  # (S, S)
        s = s + pad_bias                                        # mask keys
        s = s - jnp.max(s, axis=-1, keepdims=True)
        p = jnp.exp(s)
        p = p * pl.reciprocal(jnp.sum(p, axis=-1, keepdims=True), approx=True)
        ctx_parts.append(jnp.dot(p.astype(jnp.bfloat16), vb[:, lo:lo + d_k],
                                 preferred_element_type=jnp.float32))

    # Assemble the full (S, D) context and do ONE full-K output projection
    # (restores full MXU contraction depth vs. per-head partial matmuls).
    ctx = jnp.concatenate(ctx_parts, axis=-1)                   # (S, D) f32
    out = x + bo_ref[...] + jnp.dot(ctx.astype(jnp.bfloat16), wo_ref[...],
                                    preferred_element_type=jnp.float32)
    o_ref[...] = out.astype(o_ref.dtype)


def attention_block(x, key_pad, lp, *, heads, d_k, scale, eps=1e-6):
    B, S, D = x.shape
    kernel = functools.partial(_attn_block_kernel, heads=heads, d_k=d_k,
                               scale=scale, eps=eps)
    vmem = _vmem_limit(
        4 * S * D * 4,                       # x in + out blocks, double-buffered, f32
        4 * S * 4,                           # mask
        (D * 3 * D + D * D) * 2 * 2,         # bf16 Wqkv + Wo (<= 2 buffers)
        (3 * D + 4 * D) * 4 * 2,             # biases + LN params (f32)
        S * 3 * D * 4 + 2 * S * S * 4 + 2 * S * D * 4,   # in-kernel temporaries
    )
    return pl.pallas_call(
        kernel,
        out_shape=jax.ShapeDtypeStruct((B, S, D), x.dtype),
        grid=(B,),
        in_specs=[
            # `None` squeezes the size-1 batch dim (kernel sees (S, D)).
            pl.BlockSpec((None, S, D), lambda b: (b, 0, 0)),    # x (residual)
            pl.BlockSpec((None, 1, S), lambda b: (b, 0, 0)),    # key-pad mask
            _const_spec((1, D), lambda b: (0, 0)),              # ln1 gamma
            _const_spec((1, D), lambda b: (0, 0)),              # ln1 beta
            _const_spec((D, 3 * D), lambda b: (0, 0)),          # fused Wqkv (bf16)
            _const_spec((1, 3 * D), lambda b: (0, 0)),          # fused bqkv
            _const_spec((D, D), lambda b: (0, 0)),              # Wo (bf16)
            _const_spec((1, D), lambda b: (0, 0)),              # bo
        ],
        out_specs=pl.BlockSpec((None, S, D), lambda b: (b, 0, 0)),
        compiler_params=pltpu.CompilerParams(
            dimension_semantics=("parallel",),
            vmem_limit_bytes=vmem),
    )(x, key_pad, lp["ln1_g"], lp["ln1_b"], lp["wqkv"], lp["bqkv"],
      lp["wo"], lp["bo"])


# ---------------------------------------------------------------------------
# Kernel 2: fused FFN block  (LN2 -> W1 -> ReLU -> W2 -> +residual),
#           optionally fusing the encoder's FINAL LayerNorm into the epilogue.
# ---------------------------------------------------------------------------
def _ffn_block_kernel(x_ref, g_ref, bta_ref, w1_ref, b1_ref, w2_ref, b2_ref,
                      *rest, eps, fuse_final_ln):
    if fuse_final_ln:
        fg_ref, fb_ref, o_ref = rest
    else:
        (o_ref,) = rest

    x = x_ref[...].astype(jnp.float32)                          # (tm, D) f32
    f = _layer_norm_f32(x, g_ref[...], bta_ref[...], eps)

    # TODO(synk): for very large FF, tile the FF axis with an inner
    # accumulation loop to bound the (tm, FF) intermediate.
    inter = jnp.dot(f.astype(jnp.bfloat16), w1_ref[...],
                    preferred_element_type=jnp.float32)
    inter = jnp.maximum(inter + b1_ref[...], 0.0)
    out = jnp.dot(inter.astype(jnp.bfloat16), w2_ref[...],
                  preferred_element_type=jnp.float32)
    out = out + b2_ref[...] + x                                 # fused residual

    if fuse_final_ln:                                           # final encoder LN
        out = _layer_norm_f32(out, fg_ref[...], fb_ref[...], eps)

    o_ref[...] = out.astype(o_ref.dtype)


def ffn_block(x2d, lp, *, final_ln=None, eps=1e-6):
    M, D = x2d.shape
    FF = lp["w1"].shape[1]
    tm = _pick_row_tile(M)
    fuse = final_ln is not None

    in_specs = [
        pl.BlockSpec((tm, D), lambda i: (i, 0)),
        _const_spec((1, D), lambda i: (0, 0)),                  # ln2 gamma
        _const_spec((1, D), lambda i: (0, 0)),                  # ln2 beta
        _const_spec((D, FF), lambda i: (0, 0)),                 # W1 (bf16)
        _const_spec((1, FF), lambda i: (0, 0)),                 # b1
        _const_spec((FF, D), lambda i: (0, 0)),                 # W2 (bf16)
        _const_spec((1, D), lambda i: (0, 0)),                  # b2
    ]
    args = [x2d, lp["ln2_g"], lp["ln2_b"], lp["w1"], lp["b1"], lp["w2"], lp["b2"]]
    if fuse:
        in_specs += [_const_spec((1, D), lambda i: (0, 0)),     # final gamma
                     _const_spec((1, D), lambda i: (0, 0))]     # final beta
        args += [final_ln["g"], final_ln["b"]]

    vmem = _vmem_limit(
        4 * tm * D * 4,                      # x + out blocks, double-buffered, f32
        (D * FF + FF * D) * 2 * 2,           # bf16 W1 + W2 (<= 2 buffers)
        (FF + 6 * D) * 4 * 2,                # biases + LN params
        2 * tm * FF * 4,                     # (tm, FF) intermediate
    )
    return pl.pallas_call(
        functools.partial(_ffn_block_kernel, eps=eps, fuse_final_ln=fuse),
        out_shape=jax.ShapeDtypeStruct((M, D), x2d.dtype),
        grid=(M // tm,),
        in_specs=in_specs,
        out_specs=pl.BlockSpec((tm, D), lambda i: (i, 0)),
        compiler_params=pltpu.CompilerParams(
            dimension_semantics=("parallel",),
            vmem_limit_bytes=vmem),
    )(*args)


# ---------------------------------------------------------------------------
# Standalone row-tiled LayerNorm (only used if there are zero encoder layers).
# ---------------------------------------------------------------------------
def _ln_kernel(x_ref, g_ref, bta_ref, o_ref, *, eps):
    x = x_ref[...].astype(jnp.float32)
    o_ref[...] = _layer_norm_f32(x, g_ref[...], bta_ref[...], eps).astype(o_ref.dtype)


def final_layer_norm(x2d, gamma, beta, eps=1e-6):
    M, D = x2d.shape
    tm = _pick_row_tile(M)
    return pl.pallas_call(
        functools.partial(_ln_kernel, eps=eps),
        out_shape=jax.ShapeDtypeStruct((M, D), x2d.dtype),
        grid=(M // tm,),
        in_specs=[
            pl.BlockSpec((tm, D), lambda i: (i, 0)),
            _const_spec((1, D), lambda i: (0, 0)),
            _const_spec((1, D), lambda i: (0, 0)),
        ],
        out_specs=pl.BlockSpec((tm, D), lambda i: (i, 0)),
        compiler_params=pltpu.CompilerParams(
            dimension_semantics=("parallel",),
            vmem_limit_bytes=_vmem_limit(4 * tm * D * 4, 4 * D * 4)),
    )(x2d, gamma, beta)


# ----------------------------- Model (glue) --------------------------------

def sinusoid_pe(S, D):
    pos = jnp.arange(S, dtype=jnp.float32)[:, None]
    div = jnp.exp(jnp.arange(0, D, 2, dtype=jnp.float32) * (-math.log(10000.0) / D))
    pe = jnp.zeros((S, D), jnp.float32)
    pe = pe.at[:, 0::2].set(jnp.sin(pos * div))
    pe = pe.at[:, 1::2].set(jnp.cos(pos * div))
    return pe


def init_params(key, vocab_size, D, H, FF, n_layer, pad):
    keys = jax.random.split(key, 1 + n_layer)
    embed = 0.02 * jax.random.normal(keys[0], (vocab_size, D), jnp.float32)
    embed = embed.at[pad].set(0.0)            # nn.Embedding(padding_idx=pad)

    def dense(k, shape):
        return 0.02 * jax.random.normal(k, shape, jnp.float32)

    layers = []
    for li in range(n_layer):
        lk = jax.random.split(keys[1 + li], 6)
        wq, wk, wv = dense(lk[0], (D, D)), dense(lk[1], (D, D)), dense(lk[2], (D, D))
        layers.append(dict(
            ln1_g=jnp.ones((1, D), jnp.float32), ln1_b=jnp.zeros((1, D), jnp.float32),
            # Wq|Wk|Wv fused into one (D, 3D) weight -> single QKV matmul.
            # Matmul weights stored bf16 (f32 accumulation inside the kernel).
            wqkv=jnp.concatenate([wq, wk, wv], axis=1).astype(jnp.bfloat16),
            bqkv=jnp.zeros((1, 3 * D), jnp.float32),
            wo=dense(lk[3], (D, D)).astype(jnp.bfloat16),
            bo=jnp.zeros((1, D), jnp.float32),
            ln2_g=jnp.ones((1, D), jnp.float32), ln2_b=jnp.zeros((1, D), jnp.float32),
            w1=dense(lk[4], (D, FF)).astype(jnp.bfloat16),
            b1=jnp.zeros((1, FF), jnp.float32),
            w2=dense(lk[5], (FF, D)).astype(jnp.bfloat16),
            b2=jnp.zeros((1, D), jnp.float32),
        ))
    final = dict(g=jnp.ones((1, D), jnp.float32), b=jnp.zeros((1, D), jnp.float32))
    return dict(embed=embed, layers=layers, final=final)


def encoder_forward(tokens, params, *, D, H, pad):
    B, S = tokens.shape
    Dk = D // H
    scale = 1.0 / math.sqrt(Dk)

    # Embeds: embedding * sqrt(D) + sinusoidal PE (dropout = identity in eval).
    out = params["embed"][tokens] * math.sqrt(D) + sinusoid_pe(S, D)[None]

    # Only the (B, 1, S) key-padding vector is passed to the attention kernel;
    # the (B, S, S) mask of the reference is broadcast in-kernel, never stored.
    key_pad = (tokens == pad).astype(jnp.int32)[:, None, :]

    n_layers = len(params["layers"])
    for li, lp in enumerate(params["layers"]):
        out = attention_block(out, key_pad, lp, heads=H, d_k=Dk, scale=scale)
        # Final encoder LayerNorm fused into the last layer's FFN epilogue
        # (saves one full read+write of the (B*S, D) activation).
        fin = params["final"] if li == n_layers - 1 else None
        out = ffn_block(out.reshape(B * S, D), lp, final_ln=fin).reshape(B, S, D)

    if n_layers == 0:  # degenerate fallback: standalone final LN
        out = final_layer_norm(out.reshape(B * S, D),
                               params["final"]["g"],
                               params["final"]["b"]).reshape(B, S, D)
    return out


# ----------------------------------- main -----------------------------------

if __name__ == "__main__":
    # Small config consistent with the module: model_size=32, n_head=4,
    # ff=64, n_layer=2, pad=0, dropout=0.0 (eval / identity).
    B, S = 2, 8
    D, H, FF, N_LAYER = 32, 4, 64, 2
    VOCAB, PAD = 50, 0

    key = jax.random.PRNGKey(0)
    pkey, tkey = jax.random.split(key)
    params = init_params(pkey, VOCAB, D, H, FF, N_LAYER, PAD)

    tokens = jax.random.randint(tkey, (B, S), 1, VOCAB, dtype=jnp.int32)
    tokens = tokens.at[1, -2:].set(PAD)   # add padding to exercise the mask

    out = encoder_forward(tokens, params, D=D, H=H, pad=PAD)
    out = jax.block_until_ready(out)
    assert out.shape == (B, S, D) and out.dtype == jnp.float32
    assert bool(jnp.all(jnp.isfinite(out)))
    print("KERNEL_OK")
</pallas_src>

<mosaic_0001>
module attributes {stable_mosaic.version = 11 : i64} {
  func.func @_attn_block_kernel(%arg0: i32, %arg1: memref<1x8x32xf32, #tpu.memory_space<vmem>>, %arg2: memref<1x1x8xi32, #tpu.memory_space<vmem>>, %arg3: memref<1x32xf32, #tpu.memory_space<vmem>>, %arg4: memref<1x32xf32, #tpu.memory_space<vmem>>, %arg5: memref<32x96xbf16, #tpu.memory_space<vmem>>, %arg6: memref<1x96xf32, #tpu.memory_space<vmem>>, %arg7: memref<32x32xbf16, #tpu.memory_space<vmem>>, %arg8: memref<1x32xf32, #tpu.memory_space<vmem>>, %arg9: memref<1x8x32xf32, #tpu.memory_space<vmem>>) attributes {dimension_semantics = [#tpu.dimension_semantics<parallel>], iteration_bounds = array<i64: 2>, scalar_prefetch = 0 : i64, scratch_operands = 0 : i64, tpu.core_type = #tpu.core_type<tc>, window_params = [{transform_indices = @transform_0, window_bounds = array<i64: 1, 8, 32>}, {transform_indices = @transform_1, window_bounds = array<i64: 1, 1, 8>}, {pipeline_mode = #tpu.pipeline_mode<synchronous>, transform_indices = @transform_2, window_bounds = array<i64: 1, 32>}, {pipeline_mode = #tpu.pipeline_mode<synchronous>, transform_indices = @transform_3, window_bounds = array<i64: 1, 32>}, {pipeline_mode = #tpu.pipeline_mode<synchronous>, transform_indices = @transform_4, window_bounds = array<i64: 32, 96>}, {pipeline_mode = #tpu.pipeline_mode<synchronous>, transform_indices = @transform_5, window_bounds = array<i64: 1, 96>}, {pipeline_mode = #tpu.pipeline_mode<synchronous>, transform_indices = @transform_6, window_bounds = array<i64: 32, 32>}, {pipeline_mode = #tpu.pipeline_mode<synchronous>, transform_indices = @transform_7, window_bounds = array<i64: 1, 32>}, {transform_indices = @transform_8, window_bounds = array<i64: 1, 8, 32>}]} {
    %c0 = arith.constant 0 : index
    %c0_0 = arith.constant 0 : index
    %c0_1 = arith.constant 0 : index
    %0 = vector.load %arg1[%c0, %c0_0, %c0_1] : memref<1x8x32xf32, #tpu.memory_space<vmem>>, vector<1x8x32xf32>
    %1 = vector.shape_cast %0 : vector<1x8x32xf32> to vector<8x32xf32>
    %c0_2 = arith.constant 0 : index
    %c0_3 = arith.constant 0 : index
    %2 = vector.load %arg3[%c0_2, %c0_3] : memref<1x32xf32, #tpu.memory_space<vmem>>, vector<1x32xf32>
    %c0_4 = arith.constant 0 : index
    %c0_5 = arith.constant 0 : index
    %3 = vector.load %arg4[%c0_4, %c0_5] : memref<1x32xf32, #tpu.memory_space<vmem>>, vector<1x32xf32>
    %cst = arith.constant dense<0.000000e+00> : vector<8xf32>
    %4 = vector.multi_reduction <add>, %1, %cst [1] : vector<8x32xf32> to vector<8xf32>
    %5 = vector.shape_cast %4 : vector<8xf32> to vector<8x1xf32>
    %cst_6 = arith.constant 3.200000e+01 : f32
    %6 = vector.broadcast %cst_6 : f32 to vector<8x1xf32>
    %7 = arith.divf %5, %6 : vector<8x1xf32>
    %8 = vector.broadcast %7 : vector<8x1xf32> to vector<8x32xf32>
    %9 = arith.subf %1, %8 : vector<8x32xf32>
    %10 = arith.mulf %9, %9 : vector<8x32xf32>
    %cst_7 = arith.constant dense<0.000000e+00> : vector<8xf32>
    %11 = vector.multi_reduction <add>, %10, %cst_7 [1] : vector<8x32xf32> to vector<8xf32>
    %12 = vector.shape_cast %11 : vector<8xf32> to vector<8x1xf32>
    %cst_8 = arith.constant 3.200000e+01 : f32
    %13 = vector.broadcast %cst_8 : f32 to vector<8x1xf32>
    %14 = arith.divf %12, %13 : vector<8x1xf32>
    %15 = vector.broadcast %7 : vector<8x1xf32> to vector<8x32xf32>
    %16 = arith.subf %1, %15 : vector<8x32xf32>
    %cst_9 = arith.constant 9.99999997E-7 : f32
    %17 = vector.broadcast %cst_9 : f32 to vector<8x1xf32>
    %18 = arith.addf %14, %17 : vector<8x1xf32>
    %19 = math.rsqrt %18 : vector<8x1xf32>
    %20 = vector.broadcast %19 : vector<8x1xf32> to vector<8x32xf32>
    %21 = arith.mulf %16, %20 : vector<8x32xf32>
    %22 = vector.broadcast %2 : vector<1x32xf32> to vector<8x32xf32>
    %23 = arith.mulf %21, %22 : vector<8x32xf32>
    %24 = vector.broadcast %3 : vector<1x32xf32> to vector<8x32xf32>
    %25 = arith.addf %23, %24 : vector<8x32xf32>
    %26 = arith.truncf %25 : vector<8x32xf32> to vector<8x32xbf16>
    %c0_10 = arith.constant 0 : index
    %c0_11 = arith.constant 0 : index
    %27 = vector.load %arg5[%c0_10, %c0_11] : memref<32x96xbf16, #tpu.memory_space<vmem>>, vector<32x96xbf16>
    %cst_12 = arith.constant dense<0.000000e+00> : vector<8x96xf32>
    %28 = tpu.matmul %26, %27, %cst_12 {dimension_numbers = #tpu.dot_dimension_numbers<[1], [0], [0], [1], [0, 0, 1, 1], [], []>} : vector<8x32xbf16>, vector<32x96xbf16>, vector<8x96xf32> -> vector<8x96xf32>
    %c0_13 = arith.constant 0 : index
    %c0_14 = arith.constant 0 : index
    %29 = vector.load %arg6[%c0_13, %c0_14] : memref<1x96xf32, #tpu.memory_space<vmem>>, vector<1x96xf32>
    %30 = vector.broadcast %29 : vector<1x96xf32> to vector<8x96xf32>
    %31 = arith.addf %28, %30 : vector<8x96xf32>
    %32 = vector.extract_strided_slice %31 {offsets = [0, 0], sizes = [8, 32], strides = [1, 1]} : vector<8x96xf32> to vector<8x32xf32>
    %33 = vector.extract_strided_slice %31 {offsets = [0, 32], sizes = [8, 32], strides = [1, 1]} : vector<8x96xf32> to vector<8x32xf32>
    %34 = vector.extract_strided_slice %31 {offsets = [0, 64], sizes = [8, 32], strides = [1, 1]} : vector<8x96xf32> to vector<8x32xf32>
    %cst_15 = arith.constant 0.353553385 : f32
    %35 = vector.broadcast %cst_15 : f32 to vector<8x32xf32>
    %36 = arith.mulf %32, %35 : vector<8x32xf32>
    %37 = arith.truncf %36 : vector<8x32xf32> to vector<8x32xbf16>
    %38 = arith.truncf %33 : vector<8x32xf32> to vector<8x32xbf16>
    %39 = arith.truncf %34 : vector<8x32xf32> to vector<8x32xbf16>
    %c0_16 = arith.constant 0 : index
    %c0_17 = arith.constant 0 : index
    %c0_18 = arith.constant 0 : index
    %40 = vector.load %arg2[%c0_16, %c0_17, %c0_18] : memref<1x1x8xi32, #tpu.memory_space<vmem>>, vector<1x1x8xi32>
    %41 = vector.shape_cast %40 : vector<1x1x8xi32> to vector<1x8xi32>
    %c0_i32 = arith.constant 0 : i32
    %42 = vector.broadcast %c0_i32 : i32 to vector<1x8xi32>
    %43 = arith.cmpi sgt, %41, %42 : vector<1x8xi32>
    %cst_19 = arith.constant -1.000000e+09 : f32
    %cst_20 = arith.constant 0.000000e+00 : f32
    %44 = vector.broadcast %cst_19 : f32 to vector<1x8xf32>
    %45 = vector.broadcast %cst_20 : f32 to vector<1x8xf32>
    %46 = arith.select %43, %44, %45 : vector<1x8xi1>, vector<1x8xf32>
    %47 = vector.extract_strided_slice %37 {offsets = [0, 0], sizes = [8, 8], strides = [1, 1]} : vector<8x32xbf16> to vector<8x8xbf16>
    %48 = vector.extract_strided_slice %38 {offsets = [0, 0], sizes = [8, 8], strides = [1, 1]} : vector<8x32xbf16> to vector<8x8xbf16>
    %cst_21 = arith.constant dense<0.000000e+00> : vector<8x8xf32>
    %49 = tpu.matmul %47, %48, %cst_21 {dimension_numbers = #tpu.dot_dimension_numbers<[1], [1], [0], [0], [0, 0, 1, 0], [], []>} : vector<8x8xbf16>, vector<8x8xbf16>, vector<8x8xf32> -> vector<8x8xf32>
    %50 = vector.broadcast %46 : vector<1x8xf32> to vector<8x8xf32>
    %51 = arith.addf %49, %50 : vector<8x8xf32>
    %cst_22 = arith.constant dense<0xFF800000> : vector<8xf32>
    %52 = vector.multi_reduction <maximumf>, %51, %cst_22 [1] : vector<8x8xf32> to vector<8xf32>
    %53 = vector.shape_cast %52 : vector<8xf32> to vector<8x1xf32>
    %54 = vector.broadcast %53 : vector<8x1xf32> to vector<8x8xf32>
    %55 = arith.subf %51, %54 : vector<8x8xf32>
    %56 = math.exp %55 : vector<8x8xf32>
    %cst_23 = arith.constant dense<0.000000e+00> : vector<8xf32>
    %57 = vector.multi_reduction <add>, %56, %cst_23 [1] : vector<8x8xf32> to vector<8xf32>
    %58 = vector.shape_cast %57 : vector<8xf32> to vector<8x1xf32>
    %59 = tpu.reciprocal %58 {approx = true} : vector<8x1xf32> -> vector<8x1xf32>
    %60 = vector.broadcast %59 : vector<8x1xf32> to vector<8x8xf32>
    %61 = arith.mulf %56, %60 : vector<8x8xf32>
    %62 = arith.truncf %61 : vector<8x8xf32> to vector<8x8xbf16>
    %63 = vector.extract_strided_slice %39 {offsets = [0, 0], sizes = [8, 8], strides = [1, 1]} : vector<8x32xbf16> to vector<8x8xbf16>
    %cst_24 = arith.constant dense<0.000000e+00> : vector<8x8xf32>
    %64 = tpu.matmul %62, %63, %cst_24 {dimension_numbers = #tpu.dot_dimension_numbers<[1], [0], [0], [1], [0, 0, 1, 1], [], []>} : vector<8x8xbf16>, vector<8x8xbf16>, vector<8x8xf32> -> vector<8x8xf32>
    %65 = vector.extract_strided_slice %37 {offsets = [0, 8], sizes = [8, 8], strides = [1, 1]} : vector<8x32xbf16> to vector<8x8xbf16>
    %66 = vector.extract_strided_slice %38 {offsets = [0, 8], sizes = [8, 8], strides = [1, 1]} : vector<8x32xbf16> to vector<8x8xbf16>
    %cst_25 = arith.constant dense<0.000000e+00> : vector<8x8xf32>
    %67 = tpu.matmul %65, %66, %cst_25 {dimension_numbers = #tpu.dot_dimension_numbers<[1], [1], [0], [0], [0, 0, 1, 0], [], []>} : vector<8x8xbf16>, vector<8x8xbf16>, vector<8x8xf32> -> vector<8x8xf32>
    %68 = vector.broadcast %46 : vector<1x8xf32> to vector<8x8xf32>
    %69 = arith.addf %67, %68 : vector<8x8xf32>
    %cst_26 = arith.constant dense<0xFF800000> : vector<8xf32>
    %70 = vector.multi_reduction <maximumf>, %69, %cst_26 [1] : vector<8x8xf32> to vector<8xf32>
    %71 = vector.shape_cast %70 : vector<8xf32> to vector<8x1xf32>
    %72 = vector.broadcast %71 : vector<8x1xf32> to vector<8x8xf32>
    %73 = arith.subf %69, %72 : vector<8x8xf32>
    %74 = math.exp %73 : vector<8x8xf32>
    %cst_27 = arith.constant dense<0.000000e+00> : vector<8xf32>
    %75 = vector.multi_reduction <add>, %74, %cst_27 [1] : vector<8x8xf32> to vector<8xf32>
    %76 = vector.shape_cast %75 : vector<8xf32> to vector<8x1xf32>
    %77 = tpu.reciprocal %76 {approx = true} : vector<8x1xf32> -> vector<8x1xf32>
    %78 = vector.broadcast %77 : vector<8x1xf32> to vector<8x8xf32>
    %79 = arith.mulf %74, %78 : vector<8x8xf32>
    %80 = arith.truncf %79 : vector<8x8xf32> to vector<8x8xbf16>
    %81 = vector.extract_strided_slice %39 {offsets = [0, 8], sizes = [8, 8], strides = [1, 1]} : vector<8x32xbf16> to vector<8x8xbf16>
    %cst_28 = arith.constant dense<0.000000e+00> : vector<8x8xf32>
    %82 = tpu.matmul %80, %81, %cst_28 {dimension_numbers = #tpu.dot_dimension_numbers<[1], [0], [0], [1], [0, 0, 1, 1], [], []>} : vector<8x8xbf16>, vector<8x8xbf16>, vector<8x8xf32> -> vector<8x8xf32>
    %83 = vector.extract_strided_slice %37 {offsets = [0, 16], sizes = [8, 8], strides = [1, 1]} : vector<8x32xbf16> to vector<8x8xbf16>
    %84 = vector.extract_strided_slice %38 {offsets = [0, 16], sizes = [8, 8], strides = [1, 1]} : vector<8x32xbf16> to vector<8x8xbf16>
    %cst_29 = arith.constant dense<0.000000e+00> : vector<8x8xf32>
    %85 = tpu.matmul %83, %84, %cst_29 {dimension_numbers = #tpu.dot_dimension_numbers<[1], [1], [0], [0], [0, 0, 1, 0], [], []>} : vector<8x8xbf16>, vector<8x8xbf16>, vector<8x8xf32> -> vector<8x8xf32>
    %86 = vector.broadcast %46 : vector<1x8xf32> to vector<8x8xf32>
    %87 = arith.addf %85, %86 : vector<8x8xf32>
    %cst_30 = arith.constant dense<0xFF800000> : vector<8xf32>
    %88 = vector.multi_reduction <maximumf>, %87, %cst_30 [1] : vector<8x8xf32> to vector<8xf32>
    %89 = vector.shape_cast %88 : vector<8xf32> to vector<8x1xf32>
    %90 = vector.broadcast %89 : vector<8x1xf32> to vector<8x8xf32>
    %91 = arith.subf %87, %90 : vector<8x8xf32>
    %92 = math.exp %91 : vector<8x8xf32>
    %cst_31 = arith.constant dense<0.000000e+00> : vector<8xf32>
    %93 = vector.multi_reduction <add>, %92, %cst_31 [1] : vector<8x8xf32> to vector<8xf32>
    %94 = vector.shape_cast %93 : vector<8xf32> to vector<8x1xf32>
    %95 = tpu.reciprocal %94 {approx = true} : vector<8x1xf32> -> vector<8x1xf32>
    %96 = vector.broadcast %95 : vector<8x1xf32> to vector<8x8xf32>
    %97 = arith.mulf %92, %96 : vector<8x8xf32>
    %98 = arith.truncf %97 : vector<8x8xf32> to vector<8x8xbf16>
    %99 = vector.extract_strided_slice %39 {offsets = [0, 16], sizes = [8, 8], strides = [1, 1]} : vector<8x32xbf16> to vector<8x8xbf16>
    %cst_32 = arith.constant dense<0.000000e+00> : vector<8x8xf32>
    %100 = tpu.matmul %98, %99, %cst_32 {dimension_numbers = #tpu.dot_dimension_numbers<[1], [0], [0], [1], [0, 0, 1, 1], [], []>} : vector<8x8xbf16>, vector<8x8xbf16>, vector<8x8xf32> -> vector<8x8xf32>
    %101 = vector.extract_strided_slice %37 {offsets = [0, 24], sizes = [8, 8], strides = [1, 1]} : vector<8x32xbf16> to vector<8x8xbf16>
    %102 = vector.extract_strided_slice %38 {offsets = [0, 24], sizes = [8, 8], strides = [1, 1]} : vector<8x32xbf16> to vector<8x8xbf16>
    %cst_33 = arith.constant dense<0.000000e+00> : vector<8x8xf32>
    %103 = tpu.matmul %101, %102, %cst_33 {dimension_numbers = #tpu.dot_dimension_numbers<[1], [1], [0], [0], [0, 0, 1, 0], [], []>} : vector<8x8xbf16>, vector<8x8xbf16>, vector<8x8xf32> -> vector<8x8xf32>
    %104 = vector.broadcast %46 : vector<1x8xf32> to vector<8x8xf32>
    %105 = arith.addf %103, %104 : vector<8x8xf32>
    %cst_34 = arith.constant dense<0xFF800000> : vector<8xf32>
    %106 = vector.multi_reduction <maximumf>, %105, %cst_34 [1] : vector<8x8xf32> to vector<8xf32>
    %107 = vector.shape_cast %106 : vector<8xf32> to vector<8x1xf32>
    %108 = vector.broadcast %107 : vector<8x1xf32> to vector<8x8xf32>
    %109 = arith.subf %105, %108 : vector<8x8xf32>
    %110 = math.exp %109 : vector<8x8xf32>
    %cst_35 = arith.constant dense<0.000000e+00> : vector<8xf32>
    %111 = vector.multi_reduction <add>, %110, %cst_35 [1] : vector<8x8xf32> to vector<8xf32>
    %112 = vector.shape_cast %111 : vector<8xf32> to vector<8x1xf32>
    %113 = tpu.reciprocal %112 {approx = true} : vector<8x1xf32> -> vector<8x1xf32>
    %114 = vector.broadcast %113 : vector<8x1xf32> to vector<8x8xf32>
    %115 = arith.mulf %110, %114 : vector<8x8xf32>
    %116 = arith.truncf %115 : vector<8x8xf32> to vector<8x8xbf16>
    %117 = vector.extract_strided_slice %39 {offsets = [0, 24], sizes = [8, 8], strides = [1, 1]} : vector<8x32xbf16> to vector<8x8xbf16>
    %cst_36 = arith.constant dense<0.000000e+00> : vector<8x8xf32>
    %118 = tpu.matmul %116, %117, %cst_36 {dimension_numbers = #tpu.dot_dimension_numbers<[1], [0], [0], [1], [0, 0, 1, 1], [], []>} : vector<8x8xbf16>, vector<8x8xbf16>, vector<8x8xf32> -> vector<8x8xf32>
    %119 = tpu.concatenate %64, %82, %100, %118 in 1 : vector<8x8xf32>, vector<8x8xf32>, vector<8x8xf32>, vector<8x8xf32> -> vector<8x32xf32>
    %c0_37 = arith.constant 0 : index
    %c0_38 = arith.constant 0 : index
    %120 = vector.load %arg8[%c0_37, %c0_38] : memref<1x32xf32, #tpu.memory_space<vmem>>, vector<1x32xf32>
    %121 = vector.broadcast %120 : vector<1x32xf32> to vector<8x32xf32>
    %122 = arith.addf %1, %121 : vector<8x32xf32>
    %123 = arith.truncf %119 : vector<8x32xf32> to vector<8x32xbf16>
    %c0_39 = arith.constant 0 : index
    %c0_40 = arith.constant 0 : index
    %124 = vector.load %arg7[%c0_39, %c0_40] : memref<32x32xbf16, #tpu.memory_space<vmem>>, vector<32x32xbf16>
    %cst_41 = arith.constant dense<0.000000e+00> : vector<8x32xf32>
    %125 = tpu.matmul %123, %124, %cst_41 {dimension_numbers = #tpu.dot_dimension_numbers<[1], [0], [0], [1], [0, 0, 1, 1], [], []>} : vector<8x32xbf16>, vector<32x32xbf16>, vector<8x32xf32> -> vector<8x32xf32>
    %126 = arith.addf %122, %125 : vector<8x32xf32>
    %c0_42 = arith.constant 0 : index
    %c0_43 = arith.constant 0 : index
    %c0_44 = arith.constant 0 : index
    %127 = vector.load %arg9[%c0_42, %c0_43, %c0_44] : memref<1x8x32xf32, #tpu.memory_space<vmem>>, vector<1x8x32xf32>
    %128 = vector.shape_cast %127 : vector<1x8x32xf32> to vector<8x32xf32>
    %129 = vector.shape_cast %126 : vector<8x32xf32> to vector<1x8x32xf32>
    tpu.vector_store %arg9[%c0_42, %c0_43, %c0_44], %129 {strides = array<i32>} : memref<1x8x32xf32, #tpu.memory_space<vmem>>, vector<1x8x32xf32>,
    return
  }
  func.func @transform_0(%arg0: i32) -> (i32, i32, i32) {
    %c0_i32 = arith.constant 0 : i32
    %c0_i32_0 = arith.constant 0 : i32
    %c0_i32_1 = arith.constant 0 : i32
    return %arg0, %c0_i32, %c0_i32_0 : i32, i32, i32
  }
  func.func @transform_1(%arg0: i32) -> (i32, i32, i32) {
    %c0_i32 = arith.constant 0 : i32
    %c0_i32_0 = arith.constant 0 : i32
    %c0_i32_1 = arith.constant 0 : i32
    return %arg0, %c0_i32, %c0_i32_0 : i32, i32, i32
  }
  func.func @transform_2(%arg0: i32) -> (i32, i32) {
    %c0_i32 = arith.constant 0 : i32
    %c0_i32_0 = arith.constant 0 : i32
    %c0_i32_1 = arith.constant 0 : i32
    return %c0_i32, %c0_i32_0 : i32, i32
  }
  func.func @transform_3(%arg0: i32) -> (i32, i32) {
    %c0_i32 = arith.constant 0 : i32
    %c0_i32_0 = arith.constant 0 : i32
    %c0_i32_1 = arith.constant 0 : i32
    return %c0_i32, %c0_i32_0 : i32, i32
  }
  func.func @transform_4(%arg0: i32) -> (i32, i32) {
    %c0_i32 = arith.constant 0 : i32
    %c0_i32_0 = arith.constant 0 : i32
    %c0_i32_1 = arith.constant 0 : i32
    return %c0_i32, %c0_i32_0 : i32, i32
  }
  func.func @transform_5(%arg0: i32) -> (i32, i32) {
    %c0_i32 = arith.constant 0 : i32
    %c0_i32_0 = arith.constant 0 : i32
    %c0_i32_1 = arith.constant 0 : i32
    return %c0_i32, %c0_i32_0 : i32, i32
  }
  func.func @transform_6(%arg0: i32) -> (i32, i32) {
    %c0_i32 = arith.constant 0 : i32
    %c0_i32_0 = arith.constant 0 : i32
    %c0_i32_1 = arith.constant 0 : i32
    return %c0_i32, %c0_i32_0 : i32, i32
  }
  func.func @transform_7(%arg0: i32) -> (i32, i32) {
    %c0_i32 = arith.constant 0 : i32
    %c0_i32_0 = arith.constant 0 : i32
    %c0_i32_1 = arith.constant 0 : i32
    return %c0_i32, %c0_i32_0 : i32, i32
  }
  func.func @transform_8(%arg0: i32) -> (i32, i32, i32) {
    %c0_i32 = arith.constant 0 : i32
    %c0_i32_0 = arith.constant 0 : i32
    %c0_i32_1 = arith.constant 0 : i32
    return %arg0, %c0_i32, %c0_i32_0 : i32, i32, i32
  }
}

</mosaic_0001>

<bundles_post_ra>
// kernel: tpu_custom_call.1
= control target key start
LH: loop header
LB: loop body
LE: loop exit
PB: predicated region body
PF: predicated region fallthrough
CT: control target
= control target key end

     0   :  { %s1557_s0 = inlined_call_operand.hbm [shape: f32[2,8,32], index: 0, kind: input, shape index: {}]   ;;  %s1558_s1 = inlined_call_operand.hbm [shape: s32[2,1,8], index: 1, kind: input, shape index: {}]   ;;  %s1559_s2 = inlined_call_operand.vmem [shape: f32[1,32], index: 2, kind: input, shape index: {}]   ;;  %s1560_s3 = inlined_call_operand.vmem [shape: f32[1,32], index: 3, kind: input, shape index: {}]   ;;  %s1561_s4 = inlined_call_operand.hbm [shape: bf16[32,96], index: 4, kind: input, shape index: {}]   ;;  %s1562_s5 = inlined_call_operand.vmem [shape: f32[1,96], index: 5, kind: input, shape index: {}]   ;;  %s1563_s6 = inlined_call_operand.hbm [shape: bf16[32,32], index: 6, kind: input, shape index: {}]   ;;  %s1564_s7 = inlined_call_operand.vmem [shape: f32[1,32], index: 7, kind: input, shape index: {}]   ;;  %s1565_s8 = inlined_call_operand.hbm [shape: f32[2,8,32], index: 8, kind: output, shape index: {}]  }
   0x1   :  { %1570 = sst [smem:[#allocation20_spill]] %s1561_s4 }
   0x2   :  { %1571 = sst [smem:[#allocation21_spill]] %s1563_s6 }
   0x3   :  { %13 = vsyncpa [#allocation3], 0 }
   0x4   :  { %15 = vsyncpa [#allocation3 + $0x1], 0 }
   0x5   :  { %16 = vsyncpa [#allocation6], 0 }
   0x6   :  { %18 = vsyncpa [#allocation6 + $0x1], 0 }
   0x7   :  { %19 = vsyncpa [#allocation9], 0 }
   0x8   :  { %20 = vsyncpa [#allocation4], 0 }
   0x9   :  { %22 = vsyncpa [#allocation4 + $0x1], 0  ;;  %s1315_s27 = smov 0   ;;  %s1317_s28 = smov 0  }
   0xa   :  { %s1319_s29 = smov 0   ;;  %s1321_s30 = smov 0  }
   0xb LB: > { %1572 = sst [smem:[#allocation16_spill]] %s1244_s29  ;;  %s1339_s12 = sadd.s32 4294967295, %s1248_s30   ;;  %s1248_s30 = sphi %s1321_s30, %s1586_s30   ;;  %s1244_s29 = sphi %s1319_s29, %s1588_s29   ;;  %s1240_s28 = sphi %s1317_s28, %s1590_s28   ;;  %s1236_s27 = sphi %s1315_s27, %s1589_s27  }
   0xc   : > { %s1573_s4 = sld [smem:[#allocation20_spill]]  ;;  %p891_p0 = scmp.ge.s32.totalorder %s1248_s30, 1 }
   0xd   : > { %p49_p1 = scmp.eq.s32.totalorder %s1339_s12, 0  ;;  %p237_p2 = scmp.lt.s32.totalorder %s1248_s30, 3 }
   0xe   : > { %s1250_s14 = smov [#allocation7]   ;;  %s1575_s6 = sld [smem:[#allocation21_spill]] }
   0xf   : > { %p1344_p3 = pnand %p891_p0, %p237_p2  ;;  %s256_s15 = sshll.u32 %s1250_s14, 4  ;;  %s257_s15 = int_to_ptr.vmem [resolvable:$true] %s256_s15 }
  0x10   : > { %s1251_s19 = smov [#allocation8]   ;;  %s1252_s21 = smov 64  }
  0x11   : > { %p950_p4 = pneg %p1344_p3  ;;  %s273_s20 = sshll.u32 %s1251_s19, 4  ;;  %s274_s20 = int_to_ptr.vmem [resolvable:$true] %s273_s20 }
  0x12   : > { %s254_s11 = sshll.u32 %s1573_s4, 4  ;;  %s1253_s22 = smov 4   ;;  %s255_s11 = int_to_ptr.hbm [resolvable:$true] %s254_s11 }
  0x13   : > { %p951_p6 = pnand %p950_p4, %p49_p1  ;;  %s890_s23 = sadd.s32 4294967294, %s1248_s30  }
  0x14   : > { %s271_s18 = sshll.u32 %s1575_s6, 4  ;;  %s1358_s24 = sadd.s32 1, %s1248_s30   ;;  %s272_s18 = int_to_ptr.hbm [resolvable:$true] %s271_s18 }
  0x15   : > { %953 = dma.hbm_to_vmem [thread:$0]  (!%p951_p6), %s255_s11, 256, %s257_s15, [#allocation6], %s1252_s21, %s1252_s21, %s1253_s22  }
  0x16   : > { %956 = dma.hbm_to_vmem [thread:$0]  (!%p951_p6), %s272_s18, 256, %s274_s20, [#allocation9], %s1252_s21, %s1252_s21, %s1253_s22  }
  0x17   : > { %1576 = sst [smem:[#allocation17_spill]] %s1358_s24  ;;  %s32_s25 = ssub.s32 %s1248_s30, %s1358_s24 }
  0x18   : > { %s35_s26 = sadd.s32 1, %s1244_s29  ;;  %p33_p7 = scmp.eq.s32.totalorder %s32_s25, 0 }
  0x19   : > { %p42_p8 = scmp.ne.s32.totalorder %s1244_s29, %s1240_s28  ;;  %p43_p9 = scmp.eq.s32.totalorder %s1248_s30, 0 }
  0x1a   : > { %p48_p10 = scmp.ne.s32.totalorder %s1240_s28, %s1236_s27  ;;  %p224_p13 = scmp.eq.s32.totalorder %s1339_s12, 1 }
  0x1b   : > { %s1369_s9 = scalar_select %p33_p7, %s1244_s29, %s35_s26  }
  0x1c   : > { %p1371_p11 = por %p43_p9, %p42_p8  ;;  %p1377_p12 = por %p49_p1, %p48_p10 }
  0x1d   : > { %1577 = sst [smem:[#allocation18_spill]] %s1369_s9  ;;  %p230_p0 = scmp.eq.s32.totalorder %s890_s23, 1 }
  0x1e   : > { %p970_p2 = scmp.lt.s32.totalorder %s1248_s30, 2  ;;  %s1384_s14 = sand.u32 1, %s1244_s29  }
  0x1f   : > { %p1386_p4 = por %p224_p13, %p42_p8  ;;  %p1390_p6 = por %p230_p0, %p48_p10 }
  0x20   : > { %s895_s17 = sshll.u32 %s1384_s14, 3  ;;  %s896_s18 = sshll.u32 %s1248_s30, 3 }
  0x21   : > { %s1581_s16 = scalar_select %p1390_p6, 1, 0 }
  0x22   : > { %s298_s21 = scalar_lea.hbm %s1557_s0, %s896_s18  ;;  %s294_s22 = scalar_lea.vmem [#allocation2], %s895_s17 }
  0x23   : > { %1582 = sst [smem:[#allocation19_spill]] %s1581_s16  ;;  %s302_s23 = sshll.u32 %s294_s22, 4  ;;  %s303_s23 = int_to_ptr.vmem [resolvable:$true] %s302_s23 }
  0x24   : > { %s300_s25 = sshll.u32 %s298_s21, 4  ;;  %p1401_p7 = pnand %p970_p2, %p1371_p11  ;;  %s301_s25 = int_to_ptr.hbm [resolvable:$true] %s300_s25 }
  0x25   : > { %s309_s4 = sand.u32 1, %s1248_s30   ;;  %s291_s6 = scalar_lea.sflag [#allocation3], %s1384_s14 }
  0x26   : > { %s1110_s9 = sshra.s32 %s301_s25, 4  ;;  %p1114_p9 = pneg %p1401_p7  ;;  %s1111_s9 = int_to_ptr.hbm [resolvable:$true] %s1110_s9 }
  0x27   : > { %s1112_s29 = scalar_lea.hbm %s1111_s9, 8  ;;  %s1117_s18 = scalar_lea.hbm %s1557_s0, 16 }
  0x28   : > { %p1113_p8 = scmp.ne.s32.totalorder %s1111_s9, %s1112_s29  ;;  %p1118_p11 = scmp.lt.s32.totalorder %s1111_s9, %s1557_s0 }
  0x29   : > { %p1119_p0 = scmp.lt.s32.totalorder %s1117_s18, %s1112_s29 }
  0x2a   : > { %p1115_p10 = pnand %p1114_p9, %p1113_p8 }
  0x2b   : > { %p1120_p2 = por %p1119_p0, %p1118_p11 }
  0x2c   : > { %p1116_p13 = pneg %p1115_p10 }
  0x2e   : > { %p1121_p5 = pnand %p1120_p2, %p1116_p13 }
  0x30   : > { %1124 = shalt.err (!%p1121_p5)
}
  0x31   : > { %960 = dma.hbm_to_vmem [thread:$0]  (!%p1401_p7), %s301_s25, 128, %s303_s23, %s291_s6  }
  0x32   : > { %s315_s24 = scalar_lea.hbm %s1558_s1, %s1248_s30  ;;  %s312_s17 = scalar_lea.vmem [#allocation5], %s1384_s14 }
  0x33   : > { %s319_s10 = sshll.u32 %s312_s17, 4  ;;  %s317_s16 = sshll.u32 %s315_s24, 4  ;;  %s320_s10 = int_to_ptr.vmem [resolvable:$true] %s319_s10  ;;  %s318_s16 = int_to_ptr.hbm [resolvable:$true] %s317_s16 }
  0x34   : > { %s310_s9 = scalar_lea.sflag [#allocation6], %s309_s4  ;;  %s1140_s29 = sshra.s32 %s318_s16, 4  ;;  %s1141_s29 = int_to_ptr.hbm [resolvable:$true] %s1140_s29 }
  0x35   : > { %s1142_s18 = scalar_lea.hbm %s1141_s29, 1  ;;  %s1147_s23 = scalar_lea.hbm %s1558_s1, 2 }
  0x36   : > { %p1143_p5 = scmp.ne.s32.totalorder %s1141_s29, %s1142_s18  ;;  %p1148_p13 = scmp.lt.s32.totalorder %s1141_s29, %s1558_s1 }
  0x37   : > { %p1149_p11 = scmp.lt.s32.totalorder %s1147_s23, %s1142_s18 }
  0x38   : > { %p1145_p8 = pnand %p1143_p5, %p1114_p9 }
  0x39   : > { %p1150_p0 = por %p1149_p11, %p1148_p13 }
  0x3a   : > { %p1146_p10 = pneg %p1145_p8 }
  0x3c   : > { %p1151_p2 = pnand %p1150_p0, %p1146_p10 }
  0x3e   : > { %1154 = shalt.err (!%p1151_p2)
}
  0x3f   : > { %963 = dma.hbm_to_vmem [thread:$0]  (!%p1401_p7), %s318_s16, 16, %s320_s10, %s310_s9  }
  0x40   : > { %328 = sbr.rel (%p1344_p3) target bundleno = 1405 (0x57d), region = 52  ;;  %s1439_s4 = sand.u32 (!%p1344_p3), 1, %s1240_s28  }
  0x41   : > { %s898_s24 = sshll.u32 (!%p1344_p3), %s1439_s4, 3  ;;  %s331_s14 = scalar_lea.sflag (!%p1344_p3), [#allocation3], %s1439_s4 }
  0x42   : > { %s334_s21 = scalar_lea.vmem (!%p1344_p3), [#allocation2], %s898_s24 }
  0x45   : > { %1215 = dma.done.wait (%p1377_p12), %s331_s14, 128  }
  0x46   : > { %1217 = vsyncadd (%p1377_p12), %s331_s14, 4294967168  ;;  %s340_s13 = sand.u32 1, %s1339_s12   ;;  %s343_s26 = scalar_lea.vmem [#allocation5], %s1439_s4 }
  0x47   : > { %s341_s16 = scalar_lea.sflag [#allocation6], %s340_s13 }
  0x48   : > { %1219 = dma.done.wait (%p1377_p12), %s341_s16, 16  }
  0x49   : > { %1221 = vsyncadd (%p1377_p12), %s341_s16, 4294967280 }
  0x4a   : > { %1223 = dma.done.wait (%p49_p1), [#allocation6], 256  }
  0x4b   : > { %1225 = vsyncadd (%p49_p1), [#allocation6], 4294967040 }
  0x4c   : > { %1227 = dma.done.wait (%p49_p1), [#allocation9], 256  }
  0x4d   : > { %1229 = vsyncadd (%p49_p1), [#allocation9], 4294967040  ;;  %vm395_vm0 = vcmask 261120   ;;  %v1463_v0 = vld [vmem:[%s334_s21] sm:$0xff]  ;;  %v1254_v2 = vmov 32.0   ;;  %v932_v15 = vld [vmem:[#allocation7] sm:$0xff] }
  0x4e   : > { %v396_v1 = vsel %vm395_vm0, %v1463_v0, 0.0  ;;  %1030 = vrcp.f32 %v1254_v2  ;;  %v933_v14 = vld [vmem:[#allocation7 + $0x8] sm:$0xff]  ;;  %s1255_s18 = smov 96   ;;  %s1256_s19 = smov 104   ;;  %vm484_vm5 = vcmask 64512   ;;  %v1262_v55 = vmov 0.0  }
  0x4f   : > { %397 = vadd.xlane.f32.xlu0 %v396_v1  ;;  %463 = vmatpush.bf16.msra.mxu0 %v933_v14  ;;  %v1026_v25 = vld [vmem:[%s1559_s2] ss:$0 sm:$0xff]  ;;  %s1257_s6 = smov 120   ;;  %s1258_s23 = smov 88   ;;  %vm521_vm7 = vcmask 1043456   ;;  %vm722_vm8 = vcmask 130048  }
  0x50   : > { %v1027_v28 = vld [vmem:[%s1560_s3] ss:$0 sm:$0xff]  ;;  %s1259_s25 = smov 72   ;;  %s1260_s20 = smov 80   ;;  %vm724_vm9 = vcmask 195584  }
  0x51   : > { %v1028_v32 = vld [vmem:[%s1562_s5] ss:$0 sm:$0xff]  ;;  %s1261_s14 = smov 112   ;;  %s1263_s21 = smov 64  }
  0x52   : > { %v473_v54 = vld [vmem:[%s343_s26] sm:$0x1]  ;;  %s1264_s13 = smov 56   ;;  %s1265_s16 = smov 40  }
  0x53   : > { %464 = vmatpush.bf16.msra.mxu0 %v932_v15  ;;  %vm474_vm6 = vcmp.gt.s32.totalorder %v473_v54, 0  ;;  %s1266_s26 = smov 48   ;;  %s1267_s11 = smov 8  }
  0x54   : > { %v1031_v3 = vpop.eup %1030  ;;  %v475_v56 = vsel %vm474_vm6, -1e+09, %v1262_v55  ;;  %s1268_s22 = smov 24   ;;  %s1269_s17 = smov 16  }
  0x55   : > { %v400_v4 = vmul.f32 32.0, %v1031_v3  ;;  %vm404_vm1 = vweird.f32 %v1031_v3  ;;  %v477_v57 = vperm.slane %v475_v56, 0  ;;  %s929_s10 = sshll.u32 %s1339_s12, 3  ;;  %s767_s12 = scalar_lea.sflag [#allocation4], %s1439_s4 }
  0x57   : > { %v401_v5 = vsub.f32 1.0, %v400_v4 }
  0x59   : > { %v402_v6 = vmul.f32 %v1031_v3, %v401_v5 }
  0x5b   : > { %v403_v7 = vadd.f32 %v1031_v3, %v402_v6 }
  0x5d   : > { %v405_v8 = vsel %vm404_vm1, %v1031_v3, %v403_v7 }
  0xc2   : > { %v398_v9 = vpop.xlane.xlu0 %397 }
  0xc3   : > { %v406_v10 = vmul.f32 %v405_v8, %v398_v9 }
  0xc5   : > { %v407_v11 = vsub.f32 %v1463_v0, %v406_v10 }
  0xc7   : > { %v408_v12 = vmul.f32 %v407_v11, %v407_v11 }
  0xc9   : > { %v409_v13 = vsel %vm395_vm0, %v408_v12, 0.0 }
  0xca   : > { %410 = vadd.xlane.f32.xlu0 %v409_v13 }
 0x13d   : > { %v411_v16 = vpop.xlane.xlu0 %410 }
 0x13e   : > { %v412_v17 = vmul.f32 %v411_v16, %v405_v8 }
 0x140   : > { %v413_v18 = vadd.f32 1e-06, %v412_v17 }
 0x142   : > { %1032 = vrsqrt.f32 %v413_v18  ;;  %vm420_vm3 = vweird.f32 %v413_v18 }
 0x148   : > { %v1033_v19 = vpop.eup %1032 }
 0x149   : > { %v415_v20 = vmul.f32 %v1033_v19, %v413_v18  ;;  %vm421_vm2 = vweird.f32 %v1033_v19 }
 0x14a   : > { %vm422_vm4 = vmor %vm420_vm3, %vm421_vm2 }
 0x14b   : > { %v416_v21 = vmul.f32 %v1033_v19, %v415_v20 }
 0x14d   : > { %v417_v22 = vmul.f32 0.5, %v416_v21 }
 0x14f   : > { %v418_v23 = vsub.f32 1.5, %v417_v22 }
 0x151   : > { %v419_v24 = vmul.f32 %v1033_v19, %v418_v23 }
 0x153   : > { %v423_v26 = vsel %vm422_vm4, %v1033_v19, %v419_v24 }
 0x154   : > { %v424_v27 = vmul.f32 %v423_v26, %v407_v11 }
 0x156   : > { %v428_v29 = vmul.f32 %v1026_v25, %v424_v27 }
 0x158   : > { %v432_v30 = vadd.f32 %v1027_v28, %v428_v29 }
 0x15a   : > { %v433_v31 = vpack.c.bf16 %v432_v30, %v432_v30 }
 0x15c   : > { %910 = vmatmul.msk.bf16.vlgmr.msra.gmra.mxu0 %vm395_vm0, %v433_v31 }
 0x1d9   : > { %v466_v33 = vpop.f32.mrf.mxu0 }
 0x1da   : > { %v467_v34 = vadd.f32 %v1028_v32, %v466_v33 }
 0x1dc   : > { %v470_v35 = vmul.f32 0.35355338, %v467_v34  ;;  %v472_v36 = vpack.c.bf16 %v467_v34, %v467_v34 }
 0x1de   : > { %v471_v37 = vpack.c.bf16 %v470_v35, %v470_v35  ;;  %v480_v38 = vunpack.c.l.b16 %v472_v36 }
 0x1e0   : > { %v1479_v39 = vpack.c.b16 %v480_v38, %v480_v38  ;;  %v539_v40 = vunpack.c.l.b16 %v471_v37 }
 0x1e1   : > { %v468_v41 = vpop.f32.mrf.mxu0 }
 0x1e2   : > { %482 = vrot.lane.b32.xlu1 %v1479_v39, %s1255_s18  ;;  %v540_v42 = vpack.c.b16 %v539_v40, %v539_v40 }
 0x1e4   : > { %653 = vrot.lane.b32.xlu0 %v540_v42, %s1256_s19  ;;  %541 = vrot.lane.b32.xlu2 %v540_v42, %s1257_s6  ;;  %s777_s6 = scalar_lea.hbm %s1565_s8, %s929_s10 }
 0x1ea   : > { %543 = vrot.lane.b32.xlu1 %v1479_v39, %s1258_s23  ;;  %s390_s23 = scalar_lea.vmem [#allocation10], %s898_s24  ;;  %s1190_s24 = scalar_lea.hbm %s1565_s8, 16 }
 0x1ec   : > { %655 = vrot.lane.b32.xlu2 %v1479_v39, %s1259_s25  ;;  %s779_s25 = sshll.u32 %s390_s23, 4  ;;  %s780_s25 = int_to_ptr.vmem [resolvable:$true] %s779_s25 }
 0x1f2   : > { %599 = vrot.lane.b32.xlu1 %v1479_v39, %s1260_s20  ;;  %s781_s20 = sshll.u32 %s777_s6, 4  ;;  %s782_s20 = int_to_ptr.hbm [resolvable:$true] %s781_s20 }
 0x1f4   : > { %597 = vrot.lane.b32.xlu2 %v540_v42, %s1261_s14  ;;  %s1184_s14 = sshra.s32 %s782_s20, 4  ;;  %s1185_s14 = int_to_ptr.hbm [resolvable:$true] %s1184_s14 }
 0x1f5   : > { %p1191_p7 = scmp.lt.s32.totalorder %s1185_s14, %s1565_s8 }
 0x23e   : > { %v542_v43 = vpop.permute.xlu2 %541 }
 0x246   : > { %v656_v46 = vpop.permute.xlu2 %655 }
 0x247   : > { %v661_v49 = vsel %vm484_vm5, %v656_v46, 0 }
 0x24e   : > { %v598_v52 = vpop.permute.xlu2 %597 }
 0x254   : > { %v483_v44 = vpop.permute.xlu1 %482 }
 0x255   : > { %v489_v45 = vsel %vm484_vm5, %v483_v44, 0 }
 0x256   : > { %498 = vmatpush.bf16.xpose.msra.mxu1 %v489_v45  ;;  %v654_v53 = vpop.permute.xlu0 %653 }
 0x25c   : > { %v544_v47 = vpop.permute.xlu1 %543 }
 0x25d   : > { %911 = vmatmul.msk.bf16.vlgmr.msra.gmra.mxu1 %vm484_vm5, %v471_v37  ;;  %v549_v48 = vsel %vm484_vm5, %v544_v47, 0 }
 0x25e   : > { %558 = vmatpush.bf16.xpose.msra.mxu3 %v549_v48 }
 0x264   : > { %v600_v50 = vpop.permute.xlu1 %599 }
 0x265   : > { %913 = vmatmul.msk.bf16.vlgmr.msra.gmra.mxu3 %vm484_vm5, %v542_v43  ;;  %v605_v51 = vsel %vm484_vm5, %v600_v50, 0 }
 0x266   : > { %670 = vmatpush.bf16.xpose.msrb.mxu3 %v661_v49  ;;  %614 = vmatpush.bf16.xpose.msrb.mxu0 %v605_v51 }
 0x26d   : > { %915 = vmatmul.msk.bf16.vlgmr.msrb.gmra.mxu0 %vm484_vm5, %v598_v52 }
 0x275   : > { %917 = vmatmul.msk.bf16.vlgmr.msrb.gmra.mxu3 %vm484_vm5, %v654_v53 }
 0x2da   : > { %v500_v58 = vpop.f32.mrf.mxu1 }
 0x2db   : > { %v501_v59 = vadd.f32 %v500_v58, %v477_v57 }
 0x2dd   : > { %v504_v60 = vsel %vm484_vm5, %v501_v59, -inf }
 0x2de   : > { %505 = vmax.xlane.f32.xlu1 %v504_v60 }
 0x2e2   : > { %v502_v61 = vpop.f32.mrf.mxu1 }
 0x2e8   : > { %v560_v62 = vpop.f32.mrf.mxu3 }
 0x2e9   : > { %v561_v63 = vadd.f32 %v560_v62, %v477_v57 }
 0x2ea   : > { %v616_v1 = vpop.f32.mrf.mxu0 }
 0x2eb   : > { %v564_v2 = vsel %vm484_vm5, %v561_v63, -inf  ;;  %v617_v3 = vadd.f32 %v616_v1, %v477_v57  ;;  %v934_v1 = vld [vmem:[#allocation8] sm:$0xff] }
 0x2ec   : > { %565 = vmax.xlane.f32.xlu2 %v564_v2 }
 0x2ed   : > { %v620_v6 = vsel %vm484_vm5, %v617_v3, -inf }
 0x2f0   : > { %v562_v4 = vpop.f32.mrf.mxu3 }
 0x2f2   : > { %v618_v5 = vpop.f32.mrf.mxu0 }
 0x2f4   : > { %621 = vmax.xlane.f32.xlu2 %v620_v6 }
 0x2f8   : > { %v672_v7 = vpop.f32.mrf.mxu3 }
 0x2f9   : > { %v673_v8 = vadd.f32 %v672_v7, %v477_v57 }
 0x2fb   : > { %v676_v9 = vsel %vm484_vm5, %v673_v8, -inf }
 0x2fc   : > { %677 = vmax.xlane.f32.xlu0 %v676_v9  ;;  %v1029_v9 = vld [vmem:[%s1564_s7] ss:$0 sm:$0xff] }
 0x300   : > { %v674_v10 = vpop.f32.mrf.mxu3 }
 0x301   : > { %v730_v10 = vadd.f32 %v1029_v9, %v1463_v0 }
 0x30c   : > { %516 = vrot.lane.b32.xlu2 %v1479_v39, %s1263_s21  ;;  %s1186_s21 = scalar_lea.hbm %s1185_s14, 8 }
 0x30d   : > { %p1187_p1 = scmp.ne.s32.totalorder %s1185_s14, %s1186_s21  ;;  %p1192_p9 = scmp.lt.s32.totalorder %s1190_s24, %s1186_s21 }
 0x30f   : > { %p1188_p3 = pnand %p1187_p1, %p1386_p4  ;;  %p1193_p5 = por %p1192_p9, %p1191_p7 }
 0x310   : > { %576 = vrot.lane.b32.xlu0 %v1479_v39, %s1264_s13 }
 0x311   : > { %p1189_p12 = pneg %p1188_p3 }
 0x313   : > { %p1194_p8 = pnand %p1193_p5, %p1189_p12 }
 0x314   : > { %688 = vrot.lane.b32.xlu2 %v1479_v39, %s1265_s16 }
 0x318   : > { %632 = vrot.lane.b32.xlu0 %v1479_v39, %s1266_s26 }
 0x351   : > { %v506_v11 = vpop.xlane.xlu1 %505 }
 0x352   : > { %v507_v12 = vsub.f32 %v501_v59, %v506_v11 }
 0x354   : > { %v508_v13 = vmul.f32 1.442695, %v507_v12 }
 0x356   : > { %1034 = vpow2.f32 %v508_v13 }
 0x35c   : > { %v1035_v14 = vpop.eup %1034 }
 0x35d   : > { %v510_v15 = vsel %vm484_vm5, %v1035_v14, 0.0 }
 0x35e   : > { %511 = vadd.xlane.f32.xlu1 %v510_v15 }
 0x35f   : > { %v566_v16 = vpop.xlane.xlu2 %565 }
 0x360   : > { %v567_v17 = vsub.f32 %v561_v63, %v566_v16  ;;  %v935_v63 = vld [vmem:[#allocation8 + $0x8] sm:$0xff] }
 0x361   : > { %757 = vmatpush.bf16.msra.mxu0 %v935_v63 }
 0x362   : > { %v568_v18 = vmul.f32 1.442695, %v567_v17 }
 0x364   : > { %1036 = vpow2.f32 %v568_v18 }
 0x365   : > { %758 = vmatpush.bf16.msra.mxu0 %v934_v1 }
 0x367   : > { %v622_v19 = vpop.xlane.xlu2 %621 }
 0x368   : > { %v623_v26 = vsub.f32 %v617_v3, %v622_v19 }
 0x36a   : > { %v1037_v20 = vpop.eup %1036  ;;  %v624_v28 = vmul.f32 1.442695, %v623_v26 }
 0x36b   : > { %v570_v21 = vsel %vm484_vm5, %v1037_v20, 0.0 }
 0x36c   : > { %571 = vadd.xlane.f32.xlu1 %v570_v21 }
 0x36f   : > { %v678_v22 = vpop.xlane.xlu0 %677  ;;  %v517_v23 = vpop.permute.xlu2 %516 }
 0x370   : > { %v679_v24 = vsub.f32 %v673_v8, %v678_v22  ;;  %v523_v25 = vsel %vm521_vm7, %v517_v23, 0 }
 0x371   : > { %532 = vmatpush.bf16.msra.mxu2 %v523_v25 }
 0x372   : > { %v680_v27 = vmul.f32 1.442695, %v679_v24 }
 0x374   : > { %1038 = vpow2.f32 %v680_v27 }
 0x375   : > { %1040 = vpow2.f32 %v624_v28 }
 0x377   : > { %v689_v40 = vpop.permute.xlu2 %688 }
 0x378   : > { %v694_v42 = vsel %vm521_vm7, %v689_v40, 0 }
 0x37a   : > { %v1039_v29 = vpop.eup %1038 }
 0x37b   : > { %v682_v30 = vsel %vm484_vm5, %v1039_v29, 0.0  ;;  %v1041_v31 = vpop.eup %1040 }
 0x37c   : > { %683 = vadd.xlane.f32.xlu1 %v682_v30  ;;  %v626_v34 = vsel %vm484_vm5, %v1041_v31, 0.0 }
 0x382   : > { %v577_v32 = vpop.permute.xlu0 %576 }
 0x383   : > { %v582_v33 = vsel %vm521_vm7, %v577_v32, 0 }
 0x384   : > { %591 = vmatpush.bf16.msrb.mxu2 %v582_v33  ;;  %627 = vadd.xlane.f32.xlu1 %v626_v34 }
 0x38a   : > { %v633_v35 = vpop.permute.xlu0 %632 }
 0x38b   : > { %v638_v36 = vsel %vm521_vm7, %v633_v35, 0 }
 0x38c   : > { %647 = vmatpush.bf16.msrb.mxu1 %v638_v36 }
 0x3d1   : > { %v512_v37 = vpop.xlane.xlu1 %511 }
 0x3d2   : > { %1042 = vrcp.f32 %v512_v37 }
 0x3d8   : > { %v1043_v38 = vpop.eup %1042 }
 0x3d9   : > { %v514_v39 = vmul.f32 %v1043_v38, %v1035_v14 }
 0x3db   : > { %v515_v41 = vpack.c.bf16 %v514_v39, %v514_v39 }
 0x3dd   : > { %912 = vmatmul.msk.bf16.vlgmr.msra.gmra.mxu2 %vm484_vm5, %v515_v41 }
 0x3de   : > { %703 = vmatpush.bf16.msra.mxu2 %v694_v42 }
 0x3df   : > { %v572_v43 = vpop.xlane.xlu1 %571 }
 0x3e0   : > { %1044 = vrcp.f32 %v572_v43 }
 0x3e6   : > { %v1045_v44 = vpop.eup %1044 }
 0x3e7   : > { %v574_v45 = vmul.f32 %v1045_v44, %v1037_v20 }
 0x3e9   : > { %v575_v46 = vpack.c.bf16 %v574_v45, %v574_v45 }
 0x3ed   : > { %914 = vmatmul.msk.bf16.vlgmr.msrb.gmra.mxu2 %vm484_vm5, %v575_v46 }
 0x3ef   : > { %v684_v47 = vpop.xlane.xlu1 %683 }
 0x3f0   : > { %1046 = vrcp.f32 %v684_v47 }
 0x3f6   : > { %v1047_v48 = vpop.eup %1046 }
 0x3f7   : > { %v686_v49 = vmul.f32 %v1047_v48, %v1039_v29  ;;  %v628_v50 = vpop.xlane.xlu1 %627 }
 0x3f8   : > { %1048 = vrcp.f32 %v628_v50 }
 0x3f9   : > { %v687_v51 = vpack.c.bf16 %v686_v49, %v686_v49 }
 0x3fd   : > { %918 = vmatmul.msk.bf16.vlgmr.msra.gmra.mxu2 %vm484_vm5, %v687_v51 }
 0x3fe   : > { %v1049_v52 = vpop.eup %1048 }
 0x3ff   : > { %v630_v53 = vmul.f32 %v1049_v52, %v1041_v31 }
 0x401   : > { %v631_v54 = vpack.c.bf16 %v630_v53, %v630_v53 }
 0x403   : > { %916 = vmatmul.msk.bf16.vlgmr.msrb.gmra.mxu1 %vm484_vm5, %v631_v54 }
 0x460   : > { %v534_v55 = vpop.f32.mrf.mxu2 }
 0x468   : > { %v536_v56 = vpop.f32.mrf.mxu2 }
 0x470   : > { %v593_v57 = vpop.f32.mrf.mxu2 }
 0x471   : > { %710 = vrot.lane.b32.xlu1 %v593_v57, %s1267_s11 }
 0x478   : > { %v595_v58 = vpop.f32.mrf.mxu2 }
 0x480   : > { %v649_v59 = vpop.f32.mrf.mxu1  ;;  %v705_v60 = vpop.f32.mrf.mxu2 }
 0x481   : > { %718 = vrot.lane.b32.xlu0 %v705_v60, %s1268_s22  ;;  %714 = vrot.lane.b32.xlu2 %v649_v59, %s1269_s17 }
 0x488   : > { %v651_v61 = vpop.f32.mrf.mxu1  ;;  %v707_v62 = vpop.f32.mrf.mxu2 }
 0x4db   : > { %v715_v4 = vpop.permute.xlu2 %714 }
 0x4e3   : > { %v711_v2 = vpop.permute.xlu1 %710 }
 0x4e4   : > { %v721_v3 = vsel %vm484_vm5, %v534_v55, %v711_v2 }
 0x4e5   : > { %v723_v6 = vsel %vm722_vm8, %v721_v3, %v715_v4 }
 0x4f3   : > { %v719_v5 = vpop.permute.xlu0 %718 }
 0x4f4   : > { %v725_v7 = vsel %vm724_vm9, %v723_v6, %v719_v5 }
 0x4f5   : > { %v731_v8 = vpack.c.bf16 %v725_v7, %v725_v7 }
 0x4f7   : > { %927 = vmatmul.msk.bf16.vlgmr.msra.gmra.mxu0 %vm395_vm0, %v731_v8 }
 0x574   : > { %v760_v11 = vpop.f32.mrf.mxu0 }
 0x575   : > { %v764_v12 = vadd.f32 %v760_v11, %v730_v10 }
 0x577   : > { %765 = vst.msk [vmem:[%s390_s23] sm:$0xff] %vm395_vm0, %v764_v12 }
 0x578   : > { %1197 = shalt.err (!%p1194_p8)
}
 0x579   : > { %948 = dma.vmem_to_hbm [thread:$0]  (%p1386_p4), %s780_s25, 128, %s782_s20, %s767_s12  }
 0x57c   : > { %v762_v0 = vpop.f32.mrf.mxu0 }
 0x57d PF: > { %s793_s22 = sand.u32 1, %s1236_s27   ;;  %p1585_p10 = scmp.ge.s32.totalorder %s1248_s30, 2 }
 0x57e   : > { %s794_s17 = scalar_lea.sflag [#allocation4], %s793_s22 }
 0x57f   : > { %p965_p13 = pnand %p1585_p10, %p1390_p6 }
 0x581   : > { %p966_p11 = pneg %p965_p13 }
 0x583   : > { %1231 = dma.done.wait (%p966_p11), %s794_s17, 128  }
 0x584   : > { %1233 = vsyncadd (%p966_p11), %s794_s17, 4294967168  ;;  %s1586_s30 = sld [smem:[#allocation17_spill]]  ;;  %s1589_s27 = smov %s1240_s28 }
 0x585   : > { %s1587_s10 = sld [smem:[#allocation16_spill]] }
 0x586   : > { %s1588_s29 = sld [smem:[#allocation18_spill]] }
 0x58a   : > { %p25_p0 = scmp.ge.s32.totalorder %s1586_s30, 4  }
 0x58b   : > { %s1590_s28 = smov %s1587_s10 }
 0x58c   :  { %27 = sbr.rel (!%p25_p0) target bundleno = 11 (0xb), region = 118 }
 0x591   :  { %800 = vsyncpa [#allocation3], 1 }
 0x592   :  { %802 = vsyncpa [#allocation3 + $0x1], 1 }
 0x593   :  { %803 = vsyncpa [#allocation6], 1 }
 0x594   :  { %805 = vsyncpa [#allocation6 + $0x1], 1 }
 0x595   :  { %806 = vsyncpa [#allocation9], 1 }
 0x596   :  { %807 = vsyncpa [#allocation4], 1 }
 0x597   :  { %809 = vsyncpa [#allocation4 + $0x1], 1 }

</bundles_post_ra>
